<compile_context>
chip_gen: v7x
topology: tpu7x:2x2x1
jax: 0.10.0
libtpu: 0.0.40
codegen_flags: <defaults>
</compile_context>

<pallas_src>
import functools

import jax
import jax.numpy as jnp
from jax.experimental import pallas as pl
from jax.experimental.pallas import tpu as pltpu

LANES = 128       # lane width
SUBLANES = 8      # sublane height of one f32 vreg
MAX_TR = 4096     # max rows per grid step (2 MiB f32 per input block)


def _softplus_pair(x):
    """Returns (softplus(-x), softplus(x)); one exp/log1p pair on the EUP."""
    sp_neg = jnp.maximum(-x, 0.0) + jnp.log1p(jnp.exp(-jnp.abs(x)))
    return sp_neg, sp_neg + x


def _pu_reduce_kernel(inp_ref, tgt_ref, acc_ref, *, block_rows):
    j = pl.program_id(1)                       # reduction ("arbitrary") axis

    @pl.when(j == 0)
    def _():
        acc_ref[...] = jnp.zeros_like(acc_ref)

    x = inp_ref[...].astype(jnp.float32)
    t = tgt_ref[...]                           # native dtype (f32 / bf16 / int8)
    is_pos = t == 1                            # positive labels
    is_unl = t == -1                           # unlabeled labels

    sp_neg, sp_pos = _softplus_pair(x)         # loss_func(x), loss_func(-x)

    zero = jnp.zeros_like(x)
    one = jnp.ones_like(x)

    def fold(v):
        # (TR, 128) -> (8, 128): pure VPU adds, one vreg per quantity.
        return jnp.sum(v.reshape(block_rows // SUBLANES, SUBLANES, LANES), axis=0)

    acc_ref[0] += fold(jnp.where(is_pos, one, zero))       # n_positive
    acc_ref[1] += fold(jnp.where(is_unl, one, zero))       # n_unlabeled
    acc_ref[2] += fold(jnp.where(is_pos, sp_neg, zero))    # y_positive
    acc_ref[3] += fold(jnp.where(is_pos, sp_pos, zero))    # y_positive_inv
    acc_ref[4] += fold(jnp.where(is_unl, sp_pos, zero))    # y_unlabeled


def _partial_sums_jax(x, t):
    """(5,) partial sums for a small remainder, plain JAX (fused by XLA)."""
    x = x.astype(jnp.float32)
    is_pos = t == 1
    is_unl = t == -1
    sp_neg, sp_pos = _softplus_pair(x)
    zero = jnp.zeros_like(x)
    one = jnp.ones_like(x)
    return jnp.stack([
        jnp.sum(jnp.where(is_pos, one, zero)),
        jnp.sum(jnp.where(is_unl, one, zero)),
        jnp.sum(jnp.where(is_pos, sp_neg, zero)),
        jnp.sum(jnp.where(is_pos, sp_pos, zero)),
        jnp.sum(jnp.where(is_unl, sp_pos, zero)),
    ])


@functools.partial(jax.jit, static_argnames=("prior", "gamma", "beta", "nnPU"))
def pu_loss(inp, target, *, prior=0.3, gamma=1.0, beta=0.0, nnPU=False):
    assert inp.shape == target.shape
    assert 0.0 < prior < 1.0

    n = inp.size
    x = inp.reshape(-1)
    t = target.reshape(-1)

    rows = n // LANES                       # complete 128-lane rows

    # Grid layout: (num_cores, blocks_per_core).  Leading axis is "parallel"
    # so v7x can shard across its 2 TensorCores; on 1-TC chips it is just an
    # extra (cheap) serial iteration.
    if rows >= 2 * SUBLANES:
        num_cores = 2
    elif rows >= SUBLANES:
        num_cores = 1
    else:
        num_cores = 0                       # too small for a vreg row; JAX path

    sums = jnp.zeros((5,), jnp.float32)
    n_main = 0

    if num_cores:
        rows_per_core = ((rows // num_cores) // SUBLANES) * SUBLANES
        blocks_per_core = -(-rows_per_core // MAX_TR)               # ceil div
        tr = ((rows_per_core // blocks_per_core) // SUBLANES) * SUBLANES
        rows_core_used = blocks_per_core * tr     # exact multiple of tr: no ragged block
        rows_kernel = num_cores * rows_core_used
        n_main = rows_kernel * LANES

        # Free reshape when n is lane-aligned (demo case); otherwise slices the
        # 128-aligned prefix and the <128-elem remainder is folded in below.
        x2 = x[:rows * LANES].reshape(rows, LANES)
        t2 = t[:rows * LANES].reshape(rows, LANES)

        kernel = functools.partial(_pu_reduce_kernel, block_rows=tr)
        row_block = lambda c, j: (c * blocks_per_core + j, 0)

        partials = pl.pallas_call(
            kernel,
            out_shape=jax.ShapeDtypeStruct((num_cores, 5, SUBLANES, LANES),
                                           jnp.float32),
            grid_spec=pltpu.PrefetchScalarGridSpec(
                num_scalar_prefetch=0,
                grid=(num_cores, blocks_per_core),
                in_specs=[
                    pl.BlockSpec((tr, LANES), row_block),
                    pl.BlockSpec((tr, LANES), row_block),
                ],
                # Same block across the "arbitrary" axis -> resident accumulator;
                # one slab per core along the "parallel" axis.
                out_specs=pl.BlockSpec((None, 5, SUBLANES, LANES),
                                       lambda c, j: (c, 0, 0, 0)),
            ),
            compiler_params=pltpu.CompilerParams(
                dimension_semantics=("parallel", "arbitrary"),
                vmem_limit_bytes=48 * 1024 * 1024,
            ),
        )(x2, t2)

        sums = sums + jnp.sum(partials, axis=(0, 2, 3))

    if n_main < n:                          # tiny un-tiled remainder, plain JAX
        sums = sums + _partial_sums_jax(x[n_main:], t[n_main:])

    n_positive = jnp.maximum(sums[0], 1.0)   # clamp(min=min_count=1)
    n_unlabeled = jnp.maximum(sums[1], 1.0)

    positive_risk = prior * sums[2] / n_positive
    negative_risk = -prior * sums[3] / n_positive + sums[4] / n_unlabeled

    if nnPU:
        return jnp.where(negative_risk < -beta,
                         -gamma * negative_risk,
                         positive_risk + negative_risk)
    return positive_risk + negative_risk


def _pu_loss_ref(inp, target, prior=0.3, gamma=1.0, beta=0.0, nnPU=False):
    """Pure-JAX reference mirroring the PyTorch module."""
    inp = inp.astype(jnp.float32)
    target = target.astype(jnp.float32)
    positive = (target == 1.0).astype(jnp.float32)
    unlabeled = (target == -1.0).astype(jnp.float32)
    n_pos = jnp.maximum(jnp.sum(positive), 1.0)
    n_unl = jnp.maximum(jnp.sum(unlabeled), 1.0)
    loss = lambda z: jax.nn.softplus(-z)
    y_pos = loss(inp) * positive
    y_pos_inv = loss(-inp) * positive
    y_unl = loss(-inp) * unlabeled
    pos_risk = prior * jnp.sum(y_pos) / n_pos
    neg_risk = -prior * jnp.sum(y_pos_inv) / n_pos + jnp.sum(y_unl) / n_unl
    if nnPU:
        return jnp.where(neg_risk < -beta, -gamma * neg_risk, pos_risk + neg_risk)
    return pos_risk + neg_risk


if __name__ == "__main__":
    key = jax.random.PRNGKey(0)
    k1, k2 = jax.random.split(key)

    # NCHW-shaped scores and matching {+1, -1} labels.
    shape = (2, 4, 16, 16)
    inp = jax.random.normal(k1, shape, dtype=jnp.float32)
    target = jnp.where(jax.random.bernoulli(k2, 0.3, shape), 1.0, -1.0).astype(jnp.float32)

    out = pu_loss(inp, target, prior=0.3, gamma=1.0, beta=0.0, nnPU=False)
    out = jax.block_until_ready(out)

    ref = _pu_loss_ref(inp, target, prior=0.3)
    assert jnp.allclose(out, ref, atol=1e-5, rtol=1e-5), (out, ref)

    print("KERNEL_OK")
</pallas_src>

<mosaic_0001>
module attributes {stable_mosaic.version = 11 : i64} {
  func.func @_pu_reduce_kernel(%arg0: i32, %arg1: i32, %arg2: memref<8x128xf32, #tpu.memory_space<vmem>>, %arg3: memref<8x128xf32, #tpu.memory_space<vmem>>, %arg4: memref<1x5x8x128xf32, #tpu.memory_space<vmem>>) attributes {dimension_semantics = [#tpu.dimension_semantics<parallel>, #tpu.dimension_semantics<arbitrary>], iteration_bounds = array<i64: 2, 1>, scalar_prefetch = 0 : i64, scratch_operands = 0 : i64, tpu.core_type = #tpu.core_type<tc>, window_params = [{transform_indices = @transform_0, window_bounds = array<i64: 8, 128>}, {transform_indices = @transform_1, window_bounds = array<i64: 8, 128>}, {transform_indices = @transform_2, window_bounds = array<i64: 1, 5, 8, 128>}]} {
    %c0_i32 = arith.constant 0 : i32
    %0 = arith.cmpi eq, %arg1, %c0_i32 : i32
    %1 = arith.extui %0 : i1 to i32
    %c0_i32_0 = arith.constant 0 : i32
    %2 = arith.cmpi ne, %1, %c0_i32_0 : i32
    scf.if %2 {
      %cst_51 = arith.constant 0.000000e+00 : f32
      %67 = vector.broadcast %cst_51 : f32 to vector<5x8x128xf32>
      %c0_52 = arith.constant 0 : index
      %c0_53 = arith.constant 0 : index
      %c0_54 = arith.constant 0 : index
      %c0_55 = arith.constant 0 : index
      %68 = vector.load %arg4[%c0_52, %c0_53, %c0_54, %c0_55] : memref<1x5x8x128xf32, #tpu.memory_space<vmem>>, vector<1x5x8x128xf32>
      %69 = vector.shape_cast %68 : vector<1x5x8x128xf32> to vector<5x8x128xf32>
      %70 = vector.shape_cast %67 : vector<5x8x128xf32> to vector<1x5x8x128xf32>
      tpu.vector_store %arg4[%c0_52, %c0_53, %c0_54, %c0_55], %70 {strides = array<i32>} : memref<1x5x8x128xf32, #tpu.memory_space<vmem>>, vector<1x5x8x128xf32>,
    } else {
    }
    %c0 = arith.constant 0 : index
    %c0_1 = arith.constant 0 : index
    %3 = vector.load %arg2[%c0, %c0_1] : memref<8x128xf32, #tpu.memory_space<vmem>>, vector<8x128xf32>
    %c0_2 = arith.constant 0 : index
    %c0_3 = arith.constant 0 : index
    %4 = vector.load %arg3[%c0_2, %c0_3] : memref<8x128xf32, #tpu.memory_space<vmem>>, vector<8x128xf32>
    %cst = arith.constant 1.000000e+00 : f32
    %5 = vector.broadcast %cst : f32 to vector<8x128xf32>
    %6 = arith.cmpf oeq, %4, %5 : vector<8x128xf32>
    %cst_4 = arith.constant -1.000000e+00 : f32
    %7 = vector.broadcast %cst_4 : f32 to vector<8x128xf32>
    %8 = arith.cmpf oeq, %4, %7 : vector<8x128xf32>
    %cst_5 = arith.constant 0.000000e+00 : f32
    %9 = vector.broadcast %cst_5 : f32 to vector<8x128xf32>
    %10 = arith.subf %9, %3 : vector<8x128xf32>
    %cst_6 = arith.constant 0.000000e+00 : f32
    %11 = vector.broadcast %cst_6 : f32 to vector<8x128xf32>
    %12 = arith.maximumf %10, %11 : vector<8x128xf32>
    %13 = math.absf %3 : vector<8x128xf32>
    %cst_7 = arith.constant 0.000000e+00 : f32
    %14 = vector.broadcast %cst_7 : f32 to vector<8x128xf32>
    %15 = arith.subf %14, %13 : vector<8x128xf32>
    %16 = math.exp %15 : vector<8x128xf32>
    %17 = math.log1p %16 : vector<8x128xf32>
    %18 = arith.addf %12, %17 : vector<8x128xf32>
    %19 = arith.addf %18, %3 : vector<8x128xf32>
    %cst_8 = arith.constant 0.000000e+00 : f32
    %20 = vector.broadcast %cst_8 : f32 to vector<8x128xf32>
    %cst_9 = arith.constant 1.000000e+00 : f32
    %21 = vector.broadcast %cst_9 : f32 to vector<8x128xf32>
    %c0_10 = arith.constant 0 : index
    %c0_11 = arith.constant 0 : index
    %c0_12 = arith.constant 0 : index
    %c0_13 = arith.constant 0 : index
    %22 = vector.load %arg4[%c0_10, %c0_11, %c0_12, %c0_13] : memref<1x5x8x128xf32, #tpu.memory_space<vmem>>, vector<1x1x8x128xf32>
    %23 = vector.shape_cast %22 : vector<1x1x8x128xf32> to vector<8x128xf32>
    %24 = arith.select %6, %21, %20 : vector<8x128xi1>, vector<8x128xf32>
    %25 = vector.shape_cast %24 : vector<8x128xf32> to vector<1x8x128xf32>
    %cst_14 = arith.constant dense<0.000000e+00> : vector<8x128xf32>
    %26 = vector.multi_reduction <add>, %25, %cst_14 [0] : vector<1x8x128xf32> to vector<8x128xf32>
    %27 = arith.addf %23, %26 : vector<8x128xf32>
    %c0_15 = arith.constant 0 : index
    %c0_16 = arith.constant 0 : index
    %c0_17 = arith.constant 0 : index
    %c0_18 = arith.constant 0 : index
    %28 = vector.load %arg4[%c0_15, %c0_16, %c0_17, %c0_18] : memref<1x5x8x128xf32, #tpu.memory_space<vmem>>, vector<1x1x8x128xf32>
    %29 = vector.shape_cast %28 : vector<1x1x8x128xf32> to vector<8x128xf32>
    %30 = vector.shape_cast %27 : vector<8x128xf32> to vector<1x1x8x128xf32>
    tpu.vector_store %arg4[%c0_15, %c0_16, %c0_17, %c0_18], %30 {strides = array<i32>} : memref<1x5x8x128xf32, #tpu.memory_space<vmem>>, vector<1x1x8x128xf32>,
    %c0_19 = arith.constant 0 : index
    %c1 = arith.constant 1 : index
    %c0_20 = arith.constant 0 : index
    %c0_21 = arith.constant 0 : index
    %31 = vector.load %arg4[%c0_19, %c1, %c0_20, %c0_21] : memref<1x5x8x128xf32, #tpu.memory_space<vmem>>, vector<1x1x8x128xf32>
    %32 = vector.shape_cast %31 : vector<1x1x8x128xf32> to vector<8x128xf32>
    %33 = arith.select %8, %21, %20 : vector<8x128xi1>, vector<8x128xf32>
    %34 = vector.shape_cast %33 : vector<8x128xf32> to vector<1x8x128xf32>
    %cst_22 = arith.constant dense<0.000000e+00> : vector<8x128xf32>
    %35 = vector.multi_reduction <add>, %34, %cst_22 [0] : vector<1x8x128xf32> to vector<8x128xf32>
    %36 = arith.addf %32, %35 : vector<8x128xf32>
    %c0_23 = arith.constant 0 : index
    %c1_24 = arith.constant 1 : index
    %c0_25 = arith.constant 0 : index
    %c0_26 = arith.constant 0 : index
    %37 = vector.load %arg4[%c0_23, %c1_24, %c0_25, %c0_26] : memref<1x5x8x128xf32, #tpu.memory_space<vmem>>, vector<1x1x8x128xf32>
    %38 = vector.shape_cast %37 : vector<1x1x8x128xf32> to vector<8x128xf32>
    %39 = vector.shape_cast %36 : vector<8x128xf32> to vector<1x1x8x128xf32>
    tpu.vector_store %arg4[%c0_23, %c1_24, %c0_25, %c0_26], %39 {strides = array<i32>} : memref<1x5x8x128xf32, #tpu.memory_space<vmem>>, vector<1x1x8x128xf32>,
    %c0_27 = arith.constant 0 : index
    %c2 = arith.constant 2 : index
    %c0_28 = arith.constant 0 : index
    %c0_29 = arith.constant 0 : index
    %40 = vector.load %arg4[%c0_27, %c2, %c0_28, %c0_29] : memref<1x5x8x128xf32, #tpu.memory_space<vmem>>, vector<1x1x8x128xf32>
    %41 = vector.shape_cast %40 : vector<1x1x8x128xf32> to vector<8x128xf32>
    %42 = arith.select %6, %18, %20 : vector<8x128xi1>, vector<8x128xf32>
    %43 = vector.shape_cast %42 : vector<8x128xf32> to vector<1x8x128xf32>
    %cst_30 = arith.constant dense<0.000000e+00> : vector<8x128xf32>
    %44 = vector.multi_reduction <add>, %43, %cst_30 [0] : vector<1x8x128xf32> to vector<8x128xf32>
    %45 = arith.addf %41, %44 : vector<8x128xf32>
    %c0_31 = arith.constant 0 : index
    %c2_32 = arith.constant 2 : index
    %c0_33 = arith.constant 0 : index
    %c0_34 = arith.constant 0 : index
    %46 = vector.load %arg4[%c0_31, %c2_32, %c0_33, %c0_34] : memref<1x5x8x128xf32, #tpu.memory_space<vmem>>, vector<1x1x8x128xf32>
    %47 = vector.shape_cast %46 : vector<1x1x8x128xf32> to vector<8x128xf32>
    %48 = vector.shape_cast %45 : vector<8x128xf32> to vector<1x1x8x128xf32>
    tpu.vector_store %arg4[%c0_31, %c2_32, %c0_33, %c0_34], %48 {strides = array<i32>} : memref<1x5x8x128xf32, #tpu.memory_space<vmem>>, vector<1x1x8x128xf32>,
    %c0_35 = arith.constant 0 : index
    %c3 = arith.constant 3 : index
    %c0_36 = arith.constant 0 : index
    %c0_37 = arith.constant 0 : index
    %49 = vector.load %arg4[%c0_35, %c3, %c0_36, %c0_37] : memref<1x5x8x128xf32, #tpu.memory_space<vmem>>, vector<1x1x8x128xf32>
    %50 = vector.shape_cast %49 : vector<1x1x8x128xf32> to vector<8x128xf32>
    %51 = arith.select %6, %19, %20 : vector<8x128xi1>, vector<8x128xf32>
    %52 = vector.shape_cast %51 : vector<8x128xf32> to vector<1x8x128xf32>
    %cst_38 = arith.constant dense<0.000000e+00> : vector<8x128xf32>
    %53 = vector.multi_reduction <add>, %52, %cst_38 [0] : vector<1x8x128xf32> to vector<8x128xf32>
    %54 = arith.addf %50, %53 : vector<8x128xf32>
    %c0_39 = arith.constant 0 : index
    %c3_40 = arith.constant 3 : index
    %c0_41 = arith.constant 0 : index
    %c0_42 = arith.constant 0 : index
    %55 = vector.load %arg4[%c0_39, %c3_40, %c0_41, %c0_42] : memref<1x5x8x128xf32, #tpu.memory_space<vmem>>, vector<1x1x8x128xf32>
    %56 = vector.shape_cast %55 : vector<1x1x8x128xf32> to vector<8x128xf32>
    %57 = vector.shape_cast %54 : vector<8x128xf32> to vector<1x1x8x128xf32>
    tpu.vector_store %arg4[%c0_39, %c3_40, %c0_41, %c0_42], %57 {strides = array<i32>} : memref<1x5x8x128xf32, #tpu.memory_space<vmem>>, vector<1x1x8x128xf32>,
    %c0_43 = arith.constant 0 : index
    %c4 = arith.constant 4 : index
    %c0_44 = arith.constant 0 : index
    %c0_45 = arith.constant 0 : index
    %58 = vector.load %arg4[%c0_43, %c4, %c0_44, %c0_45] : memref<1x5x8x128xf32, #tpu.memory_space<vmem>>, vector<1x1x8x128xf32>
    %59 = vector.shape_cast %58 : vector<1x1x8x128xf32> to vector<8x128xf32>
    %60 = arith.select %8, %19, %20 : vector<8x128xi1>, vector<8x128xf32>
    %61 = vector.shape_cast %60 : vector<8x128xf32> to vector<1x8x128xf32>
    %cst_46 = arith.constant dense<0.000000e+00> : vector<8x128xf32>
    %62 = vector.multi_reduction <add>, %61, %cst_46 [0] : vector<1x8x128xf32> to vector<8x128xf32>
    %63 = arith.addf %59, %62 : vector<8x128xf32>
    %c0_47 = arith.constant 0 : index
    %c4_48 = arith.constant 4 : index
    %c0_49 = arith.constant 0 : index
    %c0_50 = arith.constant 0 : index
    %64 = vector.load %arg4[%c0_47, %c4_48, %c0_49, %c0_50] : memref<1x5x8x128xf32, #tpu.memory_space<vmem>>, vector<1x1x8x128xf32>
    %65 = vector.shape_cast %64 : vector<1x1x8x128xf32> to vector<8x128xf32>
    %66 = vector.shape_cast %63 : vector<8x128xf32> to vector<1x1x8x128xf32>
    tpu.vector_store %arg4[%c0_47, %c4_48, %c0_49, %c0_50], %66 {strides = array<i32>} : memref<1x5x8x128xf32, #tpu.memory_space<vmem>>, vector<1x1x8x128xf32>,
    return
  }
  func.func @transform_0(%arg0: i32, %arg1: i32) -> (i32, i32) {
    %c1_i32 = arith.constant 1 : i32
    %0 = arith.muli %arg0, %c1_i32 : i32
    %1 = arith.addi %0, %arg1 : i32
    %c0_i32 = arith.constant 0 : i32
    %c0_i32_0 = arith.constant 0 : i32
    return %1, %c0_i32 : i32, i32
  }
  func.func @transform_1(%arg0: i32, %arg1: i32) -> (i32, i32) {
    %c1_i32 = arith.constant 1 : i32
    %0 = arith.muli %arg0, %c1_i32 : i32
    %1 = arith.addi %0, %arg1 : i32
    %c0_i32 = arith.constant 0 : i32
    %c0_i32_0 = arith.constant 0 : i32
    return %1, %c0_i32 : i32, i32
  }
  func.func @transform_2(%arg0: i32, %arg1: i32) -> (i32, i32, i32, i32) {
    %c0_i32 = arith.constant 0 : i32
    %c0_i32_0 = arith.constant 0 : i32
    %c0_i32_1 = arith.constant 0 : i32
    %c0_i32_2 = arith.constant 0 : i32
    return %arg0, %c0_i32, %c0_i32_0, %c0_i32_1 : i32, i32, i32, i32
  }
}

</mosaic_0001>

<bundles_post_ra>
// kernel: pu_loss.1
= control target key start
LH: loop header
LB: loop body
LE: loop exit
PB: predicated region body
PF: predicated region fallthrough
CT: control target
= control target key end

     0   :  { %s406_s9 = smov 0   ;;  %s408_s10 = smov 0   ;;  %s447_s0 = inlined_call_operand.vmem [shape: f32[16,128], index: 0, kind: input, shape index: {}]   ;;  %s448_s1 = inlined_call_operand.vmem [shape: f32[16,128], index: 1, kind: input, shape index: {}]   ;;  %s449_s2 = inlined_call_operand.vmem [shape: f32[2,5,8,128], index: 2, kind: output, shape index: {}]  }
   0x1   :  { %s410_s11 = smov 0  }
   0x2 LB: > { %s24_s12 = sadd.s32 1, %s384_s10  ;;  %p322_p0 = scmp.ge.s32.totalorder %s388_s11, 1  ;;  %s388_s11 = sphi %s410_s11, %s12_s11   ;;  %s384_s10 = sphi %s408_s10, %s451_s10   ;;  %s380_s9 = sphi %s406_s9, %s450_s9  }
   0x3   : > { %p26_p1 = scmp.ge.s32.totalorder %s24_s12, 2  ;;  %p140_p2 = scmp.lt.s32.totalorder %s388_s11, 3 }
   0x5   : > { %s453_s12 = smov (%p26_p1, %s24_s12), 0  ;;  %p141_p3 = pnand %p322_p0, %p140_p2 }
   0x6   : > { %p168_p4 = scmp.lt.s32.totalorder (!%p141_p3), %s380_s9, 1  ;;  %v390_v3 = vmov (!%p141_p3), 0.0  }
   0x7   : > { %144 = sbr.rel (%p141_p3) target bundleno = 57 (0x39), region = 28 }
   0xe   : > { %s455_s9 = smov (!%p168_p4, %s380_s9), 1 }
   0xf   : > { %s336_s13 = smul.u32 40, %s455_s9  ;;  %s323_s14 = sshll.u32 %s455_s9, 3 }
  0x10   : > { %s171_s17 = scalar_lea.vmem %s447_s0, %s323_s14  ;;  %s177_s20 = scalar_lea.vmem %s448_s1, %s323_s14 }
  0x11   : > { %v193_v0 = vld [vmem:[%s171_s17] sm:$0xff]  ;;  %s183_s23 = scalar_lea.vmem %s449_s2, %s336_s13 }
  0x12   : > { %v194_v1 = vld [vmem:[%s177_s20] sm:$0xff]  ;;  %v199_v2 = vand.u32 2147483647, %v193_v0  ;;  %v197_v12 = vsub.f32 0.0, %v193_v0 }
  0x13   : > { %vm195_vm0 = vcmp.eq.f32.partialorder %v194_v1, 1.0  ;;  %vm196_vm1 = vcmp.eq.f32.partialorder %v194_v1, -1.0 }
  0x14   : > { %v215_v4 = vsel %vm195_vm0, 1.0, %v390_v3  ;;  %v221_v5 = vsel %vm196_vm1, 1.0, %v390_v3  ;;  %v200_v6 = vsub.f32 0.0, %v199_v2  ;;  %v198_v16 = vmax.f32 %v197_v12, 0.0 }
  0x15   : > { %218 = vst [vmem:[%s183_s23] sm:$0xff] %v215_v4  ;;  %327 = vst [vmem:[%s183_s23 + $0x8] sm:$0xff] %v221_v5 }
  0x16   : > { %v201_v7 = vmul.f32 1.442695, %v200_v6 }
  0x18   : > { %362 = vpow2.f32 %v201_v7 }
  0x22   : > { %v363_v8 = vpop.eup %362 }
  0x23   : > { %v203_v9 = vadd.f32 1.0, %v363_v8  ;;  %v206_v10 = vmul.f32 -0.5, %v363_v8  ;;  %v209_v13 = vand.u32 2147483647, %v363_v8 }
  0x25   : > { %364 = vlog2.f32 %v203_v9  ;;  %v207_v11 = vadd.f32 1.0, %v206_v10  ;;  %vm210_vm2 = vcmp.lt.f32.partialorder %v209_v13, 0.0004427343 }
  0x27   : > { %v208_v14 = vmul.f32 %v363_v8, %v207_v11 }
  0x2f   : > { %v365_v15 = vpop.eup %364 }
  0x30   : > { %v205_v17 = vmul.f32 0.6931472, %v365_v15 }
  0x32   : > { %v211_v18 = vsel %vm210_vm2, %v208_v14, %v205_v17 }
  0x33   : > { %v212_v19 = vadd.f32 %v211_v18, %v198_v16 }
  0x35   : > { %v227_v20 = vsel %vm195_vm0, %v212_v19, 0.0  ;;  %v213_v21 = vadd.f32 %v212_v19, %v193_v0 }
  0x36   : > { %329 = vst [vmem:[%s183_s23 + $0x10] sm:$0xff] %v227_v20 }
  0x37   : > { %v233_v22 = vsel %vm195_vm0, %v213_v21, 0.0  ;;  %v239_v23 = vsel %vm196_vm1, %v213_v21, 0.0 }
  0x38   : > { %331 = vst [vmem:[%s183_s23 + $0x18] sm:$0xff] %v233_v22  ;;  %333 = vst [vmem:[%s183_s23 + $0x20] sm:$0xff] %v239_v23 }
  0x39 PF: > { %s12_s11 = sadd.s32 1, %s388_s11   ;;  %s450_s9 = smov %s384_s10 }
  0x3a   : > { %p9_p5 = scmp.ge.s32.totalorder %s12_s11, 4   ;;  %s451_s10 = smov %s453_s12 }
  0x3c   :  { %11 = sbr.rel (!%p9_p5) target bundleno = 2 (0x2), region = 69 }

</bundles_post_ra>
